<compile_context>
chip_gen: v7x
topology: tpu7x:2x2x1
jax: 0.10.0
libtpu: 0.0.40
codegen_flags: <defaults>
</compile_context>

<pallas_src>
import functools

import jax
import jax.numpy as jnp
from jax import lax
from jax.experimental import pallas as pl
from jax.experimental.pallas import tpu as pltpu


# ------------------------------- Pallas kernel ------------------------------ #

def _sdpa_kernel(q_ref, k_ref, v_ref, m_ref, out_ref, scores_ref, *, head_dim):
    q = q_ref[0]            # (H, Sq, Dh)
    k = k_ref[0]            # (H, Sk, Dh)
    v = v_ref[0]            # (H, Sk, Dh)
    mask = m_ref[0]         # (Sq, Sk) -- shared across all heads

    # (H, Sq, Sk): batched over heads, contracting the trailing Dh dim of both
    # operands, so no explicit k transpose / XLU copy is needed.
    s = lax.dot_general(q, k,
                        dimension_numbers=(((2,), (2,)), ((0,), (0,))),
                        preferred_element_type=jnp.float32)
    s = s / head_dim                                   # reference divides by d
    s = jnp.where(mask[None, :, :] == 0.0, -1e9, s)    # masked_fill(mask==0,-1e9)

    # numerically stable softmax over the last (lane) dim
    s = s - jnp.max(s, axis=-1, keepdims=True)
    p = jnp.exp(s)
    p = p * pl.reciprocal(jnp.sum(p, axis=-1, keepdims=True), approx=True)

    # TODO(synk): nn.Dropout(p) on the scores is identity here (eval mode).
    scores_ref[0] = p

    # (H, Sq, Dh): batched (over H) matmul of (Sq, Sk) x (Sk, Dh)
    out_ref[0] = lax.dot_general(p, v,
                                 dimension_numbers=(((2,), (1,)), ((0,), (0,))),
                                 preferred_element_type=jnp.float32)


# --------------------------------- wrapper ---------------------------------- #

def scaled_dot_product_attention(query, key, value, mask=None):
    """Pallas equivalent of ScaledDotProductAttention.forward (eval mode).

    query:  (B, H, Sq, Dh)   or (B, Sq, Dh)
    key:    (B, H, Sk, Dh)   or (B, Sk, Dh)
    value:  (B, H, Sk, Dh)   or (B, Sk, Dh)
    mask:   (B, Sq, Sk) float/bool 0-1 mask (broadcast across heads), or None.

    Returns (output, scores) with shapes (B, H, Sq, Dh) / (B, H, Sq, Sk)
    (head dim squeezed again if the inputs were 3-D).
    """
    squeeze_heads = query.ndim == 3
    if squeeze_heads:                      # (B, S, D) -> (B, 1, S, D)
        query, key, value = (x[:, None] for x in (query, key, value))

    B, H, Sq, Dh = query.shape
    Sk = key.shape[2]

    if mask is None:
        mask = jnp.ones((B, Sq, Sk), jnp.float32)
    else:
        if mask.ndim == 4:                 # (B, 1, Sq, Sk) -> (B, Sq, Sk)
            mask = mask[:, 0]
        mask = jnp.broadcast_to(mask.astype(jnp.float32), (B, Sq, Sk))

    kern = functools.partial(_sdpa_kernel, head_dim=float(Dh))
    out, scores = pl.pallas_call(
        kern,
        out_shape=(jax.ShapeDtypeStruct((B, H, Sq, Dh), jnp.float32),
                   jax.ShapeDtypeStruct((B, H, Sq, Sk), jnp.float32)),
        grid=(B,),
        in_specs=[pl.BlockSpec((1, H, Sq, Dh), lambda b: (b, 0, 0, 0)),
                  pl.BlockSpec((1, H, Sk, Dh), lambda b: (b, 0, 0, 0)),
                  pl.BlockSpec((1, H, Sk, Dh), lambda b: (b, 0, 0, 0)),
                  pl.BlockSpec((1, Sq, Sk), lambda b: (b, 0, 0))],
        out_specs=(pl.BlockSpec((1, H, Sq, Dh), lambda b: (b, 0, 0, 0)),
                   pl.BlockSpec((1, H, Sq, Sk), lambda b: (b, 0, 0, 0))),
        compiler_params=pltpu.CompilerParams(
            dimension_semantics=("parallel",)),
    )(query, key, value, mask)

    if squeeze_heads:
        out, scores = out[:, 0], scores[:, 0]
    return out, scores


# ------------------------------ pure-JAX reference --------------------------- #

def _reference(q, k, v, mask):
    s = jnp.einsum("bhqd,bhkd->bhqk", q, k) / q.shape[-1]
    s = jnp.where(mask[:, None] == 0, -1e9, s)
    p = jax.nn.softmax(s, axis=-1)
    o = jnp.einsum("bhqk,bhkd->bhqd", p, v)
    return o, p


# ----------------------------------- main ------------------------------------ #

if __name__ == "__main__":
    B, H, Sq, Sk, Dh = 2, 4, 8, 8, 8

    root = jax.random.PRNGKey(0)
    kq, kk, kv = jax.random.split(root, 3)
    q = jax.random.normal(kq, (B, H, Sq, Dh), jnp.float32)
    k = jax.random.normal(kk, (B, H, Sk, Dh), jnp.float32)
    v = jax.random.normal(kv, (B, H, Sk, Dh), jnp.float32)
    # causal 0/1 float mask shared across heads (like the torch masked_fill path)
    mask = jnp.tril(jnp.ones((Sq, Sk), jnp.float32))[None].repeat(B, 0)

    out, scores = scaled_dot_product_attention(q, k, v, mask)
    out, scores = jax.block_until_ready((out, scores))

    ref_out, ref_scores = _reference(q, k, v, mask)
    assert out.shape == (B, H, Sq, Dh) and scores.shape == (B, H, Sq, Sk)
    # tolerance accounts for the approx (EUP) reciprocal in the softmax denom
    assert jnp.allclose(out, ref_out, atol=2e-3, rtol=2e-3), \
        float(jnp.max(jnp.abs(out - ref_out)))
    assert jnp.allclose(scores, ref_scores, atol=2e-3, rtol=2e-3), \
        float(jnp.max(jnp.abs(scores - ref_scores)))

    print("KERNEL_OK")
</pallas_src>

<mosaic_0001>
module attributes {stable_mosaic.version = 11 : i64} {
  func.func @_sdpa_kernel(%arg0: i32, %arg1: memref<1x4x8x8xf32, #tpu.memory_space<vmem>>, %arg2: memref<1x4x8x8xf32, #tpu.memory_space<vmem>>, %arg3: memref<1x4x8x8xf32, #tpu.memory_space<vmem>>, %arg4: memref<1x8x8xf32, #tpu.memory_space<vmem>>, %arg5: memref<1x4x8x8xf32, #tpu.memory_space<vmem>>, %arg6: memref<1x4x8x8xf32, #tpu.memory_space<vmem>>) attributes {dimension_semantics = [#tpu.dimension_semantics<parallel>], iteration_bounds = array<i64: 2>, scalar_prefetch = 0 : i64, scratch_operands = 0 : i64, tpu.core_type = #tpu.core_type<tc>, window_params = [{transform_indices = @transform_0, window_bounds = array<i64: 1, 4, 8, 8>}, {transform_indices = @transform_1, window_bounds = array<i64: 1, 4, 8, 8>}, {transform_indices = @transform_2, window_bounds = array<i64: 1, 4, 8, 8>}, {transform_indices = @transform_3, window_bounds = array<i64: 1, 8, 8>}, {transform_indices = @transform_4, window_bounds = array<i64: 1, 4, 8, 8>}, {transform_indices = @transform_5, window_bounds = array<i64: 1, 4, 8, 8>}]} {
    %c0 = arith.constant 0 : index
    %c0_0 = arith.constant 0 : index
    %c0_1 = arith.constant 0 : index
    %c0_2 = arith.constant 0 : index
    %0 = vector.load %arg1[%c0, %c0_0, %c0_1, %c0_2] : memref<1x4x8x8xf32, #tpu.memory_space<vmem>>, vector<1x4x8x8xf32>
    %1 = vector.shape_cast %0 : vector<1x4x8x8xf32> to vector<4x8x8xf32>
    %c0_3 = arith.constant 0 : index
    %c0_4 = arith.constant 0 : index
    %c0_5 = arith.constant 0 : index
    %c0_6 = arith.constant 0 : index
    %2 = vector.load %arg2[%c0_3, %c0_4, %c0_5, %c0_6] : memref<1x4x8x8xf32, #tpu.memory_space<vmem>>, vector<1x4x8x8xf32>
    %3 = vector.shape_cast %2 : vector<1x4x8x8xf32> to vector<4x8x8xf32>
    %c0_7 = arith.constant 0 : index
    %c0_8 = arith.constant 0 : index
    %c0_9 = arith.constant 0 : index
    %c0_10 = arith.constant 0 : index
    %4 = vector.load %arg3[%c0_7, %c0_8, %c0_9, %c0_10] : memref<1x4x8x8xf32, #tpu.memory_space<vmem>>, vector<1x4x8x8xf32>
    %5 = vector.shape_cast %4 : vector<1x4x8x8xf32> to vector<4x8x8xf32>
    %c0_11 = arith.constant 0 : index
    %c0_12 = arith.constant 0 : index
    %c0_13 = arith.constant 0 : index
    %6 = vector.load %arg4[%c0_11, %c0_12, %c0_13] : memref<1x8x8xf32, #tpu.memory_space<vmem>>, vector<1x8x8xf32>
    %7 = vector.shape_cast %6 : vector<1x8x8xf32> to vector<8x8xf32>
    %cst = arith.constant dense<0.000000e+00> : vector<4x8x8xf32>
    %8 = tpu.matmul %1, %3, %cst {dimension_numbers = #tpu.dot_dimension_numbers<[2], [2], [1], [1], [0, 0, 0, 1, 1, 1], [0], [0]>} : vector<4x8x8xf32>, vector<4x8x8xf32>, vector<4x8x8xf32> -> vector<4x8x8xf32>
    %cst_14 = arith.constant 8.000000e+00 : f32
    %9 = vector.broadcast %cst_14 : f32 to vector<4x8x8xf32>
    %10 = arith.divf %8, %9 : vector<4x8x8xf32>
    %11 = vector.shape_cast %7 : vector<8x8xf32> to vector<1x8x8xf32>
    %cst_15 = arith.constant 0.000000e+00 : f32
    %12 = vector.broadcast %cst_15 : f32 to vector<1x8x8xf32>
    %13 = arith.cmpf oeq, %11, %12 : vector<1x8x8xf32>
    %cst_16 = arith.constant -1.000000e+09 : f32
    %14 = vector.shape_cast %13 : vector<1x8x8xi1> to vector<1x8x8xi1>
    %15 = vector.broadcast %14 : vector<1x8x8xi1> to vector<4x8x8xi1>
    %16 = vector.broadcast %cst_16 : f32 to vector<4x8x8xf32>
    %17 = arith.select %15, %16, %10 : vector<4x8x8xi1>, vector<4x8x8xf32>
    %cst_17 = arith.constant dense<0xFF800000> : vector<4x8xf32>
    %18 = vector.multi_reduction <maximumf>, %17, %cst_17 [2] : vector<4x8x8xf32> to vector<4x8xf32>
    %19 = vector.shape_cast %18 : vector<4x8xf32> to vector<4x8x1xf32>
    %20 = vector.broadcast %19 : vector<4x8x1xf32> to vector<4x8x8xf32>
    %21 = arith.subf %17, %20 : vector<4x8x8xf32>
    %22 = math.exp %21 : vector<4x8x8xf32>
    %cst_18 = arith.constant dense<0.000000e+00> : vector<4x8xf32>
    %23 = vector.multi_reduction <add>, %22, %cst_18 [2] : vector<4x8x8xf32> to vector<4x8xf32>
    %24 = vector.shape_cast %23 : vector<4x8xf32> to vector<4x8x1xf32>
    %25 = tpu.reciprocal %24 {approx = true} : vector<4x8x1xf32> -> vector<4x8x1xf32>
    %26 = vector.broadcast %25 : vector<4x8x1xf32> to vector<4x8x8xf32>
    %27 = arith.mulf %22, %26 : vector<4x8x8xf32>
    %c0_19 = arith.constant 0 : index
    %c0_20 = arith.constant 0 : index
    %c0_21 = arith.constant 0 : index
    %c0_22 = arith.constant 0 : index
    %28 = vector.load %arg6[%c0_19, %c0_20, %c0_21, %c0_22] : memref<1x4x8x8xf32, #tpu.memory_space<vmem>>, vector<1x4x8x8xf32>
    %29 = vector.shape_cast %28 : vector<1x4x8x8xf32> to vector<4x8x8xf32>
    %30 = vector.shape_cast %27 : vector<4x8x8xf32> to vector<1x4x8x8xf32>
    tpu.vector_store %arg6[%c0_19, %c0_20, %c0_21, %c0_22], %30 {strides = array<i32>} : memref<1x4x8x8xf32, #tpu.memory_space<vmem>>, vector<1x4x8x8xf32>,
    %cst_23 = arith.constant dense<0.000000e+00> : vector<4x8x8xf32>
    %31 = tpu.matmul %27, %5, %cst_23 {dimension_numbers = #tpu.dot_dimension_numbers<[2], [1], [1], [2], [0, 0, 0, 1, 1, 2], [0], [0]>} : vector<4x8x8xf32>, vector<4x8x8xf32>, vector<4x8x8xf32> -> vector<4x8x8xf32>
    %c0_24 = arith.constant 0 : index
    %c0_25 = arith.constant 0 : index
    %c0_26 = arith.constant 0 : index
    %c0_27 = arith.constant 0 : index
    %32 = vector.load %arg5[%c0_24, %c0_25, %c0_26, %c0_27] : memref<1x4x8x8xf32, #tpu.memory_space<vmem>>, vector<1x4x8x8xf32>
    %33 = vector.shape_cast %32 : vector<1x4x8x8xf32> to vector<4x8x8xf32>
    %34 = vector.shape_cast %31 : vector<4x8x8xf32> to vector<1x4x8x8xf32>
    tpu.vector_store %arg5[%c0_24, %c0_25, %c0_26, %c0_27], %34 {strides = array<i32>} : memref<1x4x8x8xf32, #tpu.memory_space<vmem>>, vector<1x4x8x8xf32>,
    return
  }
  func.func @transform_0(%arg0: i32) -> (i32, i32, i32, i32) {
    %c0_i32 = arith.constant 0 : i32
    %c0_i32_0 = arith.constant 0 : i32
    %c0_i32_1 = arith.constant 0 : i32
    %c0_i32_2 = arith.constant 0 : i32
    return %arg0, %c0_i32, %c0_i32_0, %c0_i32_1 : i32, i32, i32, i32
  }
  func.func @transform_1(%arg0: i32) -> (i32, i32, i32, i32) {
    %c0_i32 = arith.constant 0 : i32
    %c0_i32_0 = arith.constant 0 : i32
    %c0_i32_1 = arith.constant 0 : i32
    %c0_i32_2 = arith.constant 0 : i32
    return %arg0, %c0_i32, %c0_i32_0, %c0_i32_1 : i32, i32, i32, i32
  }
  func.func @transform_2(%arg0: i32) -> (i32, i32, i32, i32) {
    %c0_i32 = arith.constant 0 : i32
    %c0_i32_0 = arith.constant 0 : i32
    %c0_i32_1 = arith.constant 0 : i32
    %c0_i32_2 = arith.constant 0 : i32
    return %arg0, %c0_i32, %c0_i32_0, %c0_i32_1 : i32, i32, i32, i32
  }
  func.func @transform_3(%arg0: i32) -> (i32, i32, i32) {
    %c0_i32 = arith.constant 0 : i32
    %c0_i32_0 = arith.constant 0 : i32
    %c0_i32_1 = arith.constant 0 : i32
    return %arg0, %c0_i32, %c0_i32_0 : i32, i32, i32
  }
  func.func @transform_4(%arg0: i32) -> (i32, i32, i32, i32) {
    %c0_i32 = arith.constant 0 : i32
    %c0_i32_0 = arith.constant 0 : i32
    %c0_i32_1 = arith.constant 0 : i32
    %c0_i32_2 = arith.constant 0 : i32
    return %arg0, %c0_i32, %c0_i32_0, %c0_i32_1 : i32, i32, i32, i32
  }
  func.func @transform_5(%arg0: i32) -> (i32, i32, i32, i32) {
    %c0_i32 = arith.constant 0 : i32
    %c0_i32_0 = arith.constant 0 : i32
    %c0_i32_1 = arith.constant 0 : i32
    %c0_i32_2 = arith.constant 0 : i32
    return %arg0, %c0_i32, %c0_i32_0, %c0_i32_1 : i32, i32, i32, i32
  }
}

</mosaic_0001>

<bundles_post_ra>
// kernel: tpu_custom_call.1
= control target key start
LH: loop header
LB: loop body
LE: loop exit
PB: predicated region body
PF: predicated region fallthrough
CT: control target
= control target key end

     0   :  { %s2112_s0 = inlined_call_operand.hbm [shape: f32[2,4,8,8], index: 0, kind: input, shape index: {}]   ;;  %s2113_s1 = inlined_call_operand.hbm [shape: f32[2,4,8,8], index: 1, kind: input, shape index: {}]   ;;  %s2114_s2 = inlined_call_operand.hbm [shape: f32[2,4,8,8], index: 2, kind: input, shape index: {}]   ;;  %s2115_s3 = inlined_call_operand.hbm [shape: f32[2,8,8], index: 3, kind: input, shape index: {}]   ;;  %s2116_s4 = inlined_call_operand.hbm [shape: f32[2,4,8,8], index: 4, kind: output, shape index: {0}]   ;;  %s2117_s5 = inlined_call_operand.hbm [shape: f32[2,4,8,8], index: 5, kind: output, shape index: {1}]  }
   0x1   :  { %2126 = sst [smem:[#allocation20_spill]] %s2112_s0 }
   0x2   :  { %2127 = sst [smem:[#allocation21_spill]] %s2113_s1 }
   0x3   :  { %11 = vsyncpa [#allocation3], 0 }
   0x4   :  { %13 = vsyncpa [#allocation3 + $0x1], 0 }
   0x5   :  { %14 = vsyncpa [#allocation6], 0 }
   0x6   :  { %16 = vsyncpa [#allocation6 + $0x1], 0 }
   0x7   :  { %17 = vsyncpa [#allocation9], 0 }
   0x8   :  { %19 = vsyncpa [#allocation9 + $0x1], 0 }
   0x9   :  { %20 = vsyncpa [#allocation4], 0 }
   0xa   :  { %22 = vsyncpa [#allocation4 + $0x1], 0 }
   0xb   :  { %23 = vsyncpa [#allocation12], 0 }
   0xc   :  { %25 = vsyncpa [#allocation12 + $0x1], 0  ;;  %s1708_s18 = smov 0   ;;  %s1710_s19 = smov 0  }
   0xd   :  { %s1712_s20 = smov 0   ;;  %s1714_s21 = smov 0  }
   0xe LB: > { %2128 = sst [smem:[#allocation18_spill]] %s1660_s20  ;;  %s1729_s22 = sadd.s32 4294967295, %s1664_s21   ;;  %s1664_s21 = sphi %s1714_s21, %s2151_s21   ;;  %s1660_s20 = sphi %s1712_s20, %s2148_s20   ;;  %s1656_s19 = sphi %s1710_s19, %s2150_s19   ;;  %s1652_s18 = sphi %s1708_s18, %s2149_s18  }
   0xf   : > { %s1248_s23 = sadd.s32 4294967294, %s1664_s21   ;;  %s1733_s24 = sadd.s32 1, %s1664_s21  }
  0x10   : > { %s38_s25 = sadd.s32 1, %s1660_s20  ;;  %s35_s26 = ssub.s32 %s1664_s21, %s1733_s24 }
  0x11   : > { %p45_p0 = scmp.ne.s32.totalorder %s1660_s20, %s1656_s19  ;;  %p36_p1 = scmp.eq.s32.totalorder %s35_s26, 0 }
  0x12   : > { %p46_p2 = scmp.eq.s32.totalorder %s1664_s21, 0  ;;  %p51_p3 = scmp.ne.s32.totalorder %s1656_s19, %s1652_s18 }
  0x13   : > { %p52_p4 = scmp.eq.s32.totalorder %s1729_s22, 0  ;;  %p153_p7 = scmp.eq.s32.totalorder %s1729_s22, 1 }
  0x14   : > { %s1745_s27 = scalar_select %p36_p1, %s1660_s20, %s38_s25  }
  0x15   : > { %p47_p5 = por %p46_p2, %p45_p0  ;;  %p1747_p6 = por %p52_p4, %p51_p3 }
  0x16   : > { %2129 = sst [smem:[#allocation19_spill]] %s1745_s27  ;;  %p159_p8 = scmp.eq.s32.totalorder %s1248_s23, 1 }
  0x17   : > { %s2130_s28 = scalar_select %p1747_p6, 1, 0 }
  0x18   : > { %p1382_p10 = scmp.lt.s32.totalorder %s1664_s21, 2  ;;  %p1754_p11 = por %p153_p7, %p45_p0 }
  0x19   : > { %p1758_p12 = por %p159_p8, %p51_p3  ;;  %s1763_s6 = sand.u32 1, %s1660_s20  }
  0x1a   : > { %s2131_s29 = scalar_select %p1754_p11, 1, 0 }
  0x1b   : > { %s2132_s30 = scalar_select %p1758_p12, 1, 0 }
  0x1c   : > { %s1766_s7 = sshll.u32 %s1664_s21, 9  ;;  %s1769_s8 = sshll.u32 %s1763_s6, 5 }
  0x1d   : > { %p1771_p13 = pnand %p1382_p10, %p47_p5  ;;  %s226_s10 = sand.u32 1, %s1664_s21  }
  0x1e   : > { %s2134_s1 = sld [smem:[#allocation21_spill]]  ;;  %s230_s14 = scalar_lea.vmem [#allocation5], %s1769_s8 }
  0x1f   : > { %s2133_s9 = scalar_select %p1771_p13, 1, 0 }
  0x20   : > { %s237_s15 = sshll.u32 %s230_s14, 4  ;;  %s1786_s16 = scalar_lea.sflag [#allocation6], %s226_s10  ;;  %s1783_s15 = int_to_ptr.vmem [resolvable:$true] %s237_s15 }
  0x21   : > { %p1792_p2 = pneg %p1771_p13 }
  0x24   : > { %s1780_s13 = scalar_lea.hbm %s2134_s1, %s1766_s7  ;;  %s1443_s11 = scalar_lea.hbm %s2134_s1, 1024 }
  0x25   : > { %s1438_s17 = scalar_lea.hbm %s1780_s13, 512  ;;  %p1444_p5 = scmp.lt.u32.totalorder %s1780_s13, %s2134_s1 }
  0x26   : > { %p1439_p1 = scmp.ne.s32.totalorder %s1780_s13, %s1438_s17  ;;  %p1445_p7 = scmp.lt.u32.totalorder %s1443_s11, %s1438_s17 }
  0x27   : > { %p1447_p10 = scmp.lt.u32.totalorder %s1438_s17, %s1780_s13 }
  0x28   : > { %p1441_p3 = pnand %p1792_p2, %p1439_p1  ;;  %p1446_p8 = por %p1445_p7, %p1444_p5 }
  0x2a   : > { %p1442_p4 = pneg %p1441_p3  ;;  %p1448_p9 = por %p1447_p10, %p1446_p8 }
  0x2c   : > { %p1449_p0 = pnand %p1448_p9, %p1442_p4 }
  0x2e   : > { %1452 = shalt.err (!%p1449_p0)
}
  0x2f   : > { %s1453_s10 = scalar_lea.vmem %s1783_s15, 512  ;;  %s1666_s25 = smov [#allocation5]  }
  0x30   : > { %p1454_p1 = scmp.ne.s32.totalorder %s1783_s15, %s1453_s10  ;;  %s1458_s26 = sshll.u32 %s1666_s25, 4  ;;  %s1459_s26 = int_to_ptr.vmem [resolvable:$false] %s1458_s26 }
  0x31   : > { %s1460_s12 = scalar_lea.vmem %s1459_s26, 1024  ;;  %p1461_p11 = scmp.lt.s32.totalorder %s1783_s15, %s1459_s26 }
  0x32   : > { %p1456_p3 = pnand %p1454_p1, %p1792_p2  ;;  %p1462_p6 = scmp.lt.s32.totalorder %s1460_s12, %s1453_s10 }
  0x34   : > { %p1457_p12 = pneg %p1456_p3  ;;  %p1463_p5 = por %p1462_p6, %p1461_p11 }
  0x36   : > { %p1464_p7 = pnand %p1463_p5, %p1457_p12 }
  0x38   : > { %1467 = shalt.err (!%p1464_p7)
}
  0x39   : > { %s2120_s17 = smov 128   ;;  %s2122_s11 = smov 8  }
  0x3a   : > { %1368 = dma.hbm_to_vmem [thread:$0]  (!%p1771_p13), %s1780_s13, 512, %s1783_s15, %s1786_s16, %s2120_s17, %s2120_s17, %s2122_s11  }
  0x3b   : > { %p284_p6 = scmp.lt.s32.totalorder %s1664_s21, 3  ;;  %s2136_s0 = sld [smem:[#allocation20_spill]] }
  0x3c   : > { %p2137_p9 = scmp.ge.s32.totalorder %s1664_s21, 1  ;;  %s209_s12 = scalar_lea.vmem [#allocation2], %s1769_s8 }
  0x3d   : > { %s216_s1 = sshll.u32 %s209_s12, 4  ;;  %s206_s13 = scalar_lea.sflag [#allocation3], %s1763_s6  ;;  %s1833_s1 = int_to_ptr.vmem [resolvable:$true] %s216_s1 }
  0x3e   : > { %p1828_p11 = pnand %p2137_p9, %p284_p6 }
  0x40   : > { %s2138_s26 = scalar_select %p1828_p11, 1, 0 }
  0x41   : > { %s1824_s25 = scalar_lea.hbm %s2136_s0, %s1766_s7  ;;  %s1473_s17 = scalar_lea.hbm %s2136_s0, 1024 }
  0x42   : > { %s1468_s15 = scalar_lea.hbm %s1824_s25, 512  ;;  %p1474_p8 = scmp.lt.u32.totalorder %s1824_s25, %s2136_s0 }
  0x43   : > { %p1469_p12 = scmp.ne.s32.totalorder %s1824_s25, %s1468_s15  ;;  %p1475_p10 = scmp.lt.u32.totalorder %s1473_s17, %s1468_s15 }
  0x44   : > { %p1477_p3 = scmp.lt.u32.totalorder %s1468_s15, %s1824_s25 }
  0x45   : > { %p1471_p0 = pnand %p1469_p12, %p1792_p2  ;;  %p1476_p1 = por %p1475_p10, %p1474_p8 }
  0x47   : > { %p1472_p4 = pneg %p1471_p0  ;;  %p1478_p5 = por %p1477_p3, %p1476_p1 }
  0x49   : > { %p1479_p7 = pnand %p1478_p5, %p1472_p4 }
  0x4b   : > { %1482 = shalt.err (!%p1479_p7)
}
  0x4c   : > { %s1483_s12 = scalar_lea.vmem %s1833_s1, 512  ;;  %s1669_s14 = smov [#allocation2]  }
  0x4d   : > { %p1484_p6 = scmp.ne.s32.totalorder %s1833_s1, %s1483_s12  ;;  %s1488_s10 = sshll.u32 %s1669_s14, 4  ;;  %s1489_s10 = int_to_ptr.vmem [resolvable:$false] %s1488_s10 }
  0x4e   : > { %s1490_s27 = scalar_lea.vmem %s1489_s10, 1024  ;;  %p1491_p0 = scmp.lt.s32.totalorder %s1833_s1, %s1489_s10 }
  0x4f   : > { %p1486_p9 = pnand %p1484_p6, %p1792_p2  ;;  %p1492_p11 = scmp.lt.s32.totalorder %s1490_s27, %s1483_s12 }
  0x51   : > { %p1487_p12 = pneg %p1486_p9  ;;  %p1493_p8 = por %p1492_p11, %p1491_p0 }
  0x53   : > { %p1494_p10 = pnand %p1493_p8, %p1487_p12 }
  0x55   : > { %1497 = shalt.err (!%p1494_p10)
}
  0x56   : > { %s2139_s17 = smov 8   ;;  %s2140_s11 = smov 128  }
  0x57   : > { %1365 = dma.hbm_to_vmem [thread:$0]  (!%p1771_p13), %s1824_s25, 512, %s1833_s1, %s206_s13, %s2140_s11, %s2140_s11, %s2139_s17  }
  0x58   : > { %s1866_s12 = scalar_lea.hbm %s2114_s2, %s1766_s7  ;;  %s251_s10 = scalar_lea.vmem [#allocation7], %s1769_s8 }
  0x59   : > { %s258_s27 = sshll.u32 %s251_s10, 4  ;;  %s1498_s0 = scalar_lea.hbm %s1866_s12, 512  ;;  %s1869_s27 = int_to_ptr.vmem [resolvable:$true] %s258_s27 }
  0x5a   : > { %p1499_p11 = scmp.ne.s32.totalorder %s1866_s12, %s1498_s0  ;;  %s1503_s25 = scalar_lea.hbm %s2114_s2, 1024 }
  0x5b   : > { %p1504_p3 = scmp.lt.u32.totalorder %s1866_s12, %s2114_s2  ;;  %p1505_p5 = scmp.lt.u32.totalorder %s1503_s25, %s1498_s0 }
  0x5c   : > { %p1501_p4 = pnand %p1499_p11, %p1792_p2  ;;  %p1507_p6 = scmp.lt.u32.totalorder %s1498_s0, %s1866_s12 }
  0x5d   : > { %p1506_p7 = por %p1505_p5, %p1504_p3 }
  0x5e   : > { %p1502_p1 = pneg %p1501_p4 }
  0x5f   : > { %p1508_p9 = por %p1507_p6, %p1506_p7 }
  0x61   : > { %p1509_p12 = pnand %p1508_p9, %p1502_p1 }
  0x63   : > { %1512 = shalt.err (!%p1509_p12)
}
  0x64   : > { %s1513_s8 = scalar_lea.vmem %s1869_s27, 512  ;;  %s1670_s20 = smov [#allocation7]  }
  0x65   : > { %p1514_p0 = scmp.ne.s32.totalorder %s1869_s27, %s1513_s8  ;;  %s1518_s15 = sshll.u32 %s1670_s20, 4  ;;  %s1519_s15 = int_to_ptr.vmem [resolvable:$false] %s1518_s15 }
  0x66   : > { %s1520_s14 = scalar_lea.vmem %s1519_s15, 1024  ;;  %p1521_p11 = scmp.lt.s32.totalorder %s1869_s27, %s1519_s15 }
  0x67   : > { %p1516_p8 = pnand %p1514_p0, %p1792_p2  ;;  %p1522_p4 = scmp.lt.s32.totalorder %s1520_s14, %s1513_s8 }
  0x69   : > { %p1517_p10 = pneg %p1516_p8  ;;  %p1523_p3 = por %p1522_p4, %p1521_p11 }
  0x6b   : > { %p1524_p5 = pnand %p1523_p3, %p1517_p10 }
  0x6d   : > { %1527 = shalt.err (!%p1524_p5)
}
  0x6e   : > { %1371 = dma.hbm_to_vmem [thread:$0]  (!%p1771_p13), %s1866_s12, 512, %s1869_s27, %s1786_s16, %s2140_s11, %s2140_s11, %s2139_s17  }
  0x6f   : > { %s1260_s0 = sshll.u32 %s1763_s6, 3  ;;  %s1261_s10 = sshll.u32 %s1664_s21, 7 }
  0x70   : > { %s1901_s13 = scalar_lea.hbm %s2115_s3, %s1261_s10  ;;  %s272_s7 = scalar_lea.vmem [#allocation8], %s1260_s0 }
  0x71   : > { %s279_s8 = sshll.u32 %s272_s7, 4  ;;  %s269_s20 = scalar_lea.sflag [#allocation9], %s1763_s6  ;;  %s280_s8 = int_to_ptr.vmem [resolvable:$true] %s279_s8 }
  0x72   : > { %s1528_s15 = scalar_lea.hbm %s1901_s13, 128  ;;  %s1533_s11 = scalar_lea.hbm %s2115_s3, 256 }
  0x73   : > { %p1529_p1 = scmp.ne.s32.totalorder %s1901_s13, %s1528_s15  ;;  %p1534_p9 = scmp.lt.u32.totalorder %s1901_s13, %s2115_s3 }
  0x74   : > { %p1535_p12 = scmp.lt.u32.totalorder %s1533_s11, %s1528_s15  ;;  %p1537_p8 = scmp.lt.u32.totalorder %s1528_s15, %s1901_s13 }
  0x75   : > { %p1531_p7 = pnand %p1529_p1, %p1792_p2 }
  0x76   : > { %p1536_p0 = por %p1535_p12, %p1534_p9 }
  0x77   : > { %p1532_p6 = pneg %p1531_p7 }
  0x78   : > { %p1538_p10 = por %p1537_p8, %p1536_p0 }
  0x7a   : > { %p1539_p11 = pnand %p1538_p10, %p1532_p6 }
  0x7c   : > { %1542 = shalt.err (!%p1539_p11)
}
  0x7d   : > { %s1543_s6 = scalar_lea.vmem %s280_s8, 128  ;;  %s1671_s14 = smov [#allocation8]  }
  0x7e   : > { %p1544_p4 = scmp.ne.s32.totalorder %s280_s8, %s1543_s6  ;;  %s1548_s0 = sshll.u32 %s1671_s14, 4  ;;  %s1549_s0 = int_to_ptr.vmem [resolvable:$false] %s1548_s0 }
  0x7f   : > { %s1550_s10 = scalar_lea.vmem %s1549_s0, 256  ;;  %p1551_p1 = scmp.lt.s32.totalorder %s280_s8, %s1549_s0 }
  0x80   : > { %p1546_p3 = pnand %p1544_p4, %p1792_p2  ;;  %p1552_p7 = scmp.lt.s32.totalorder %s1550_s10, %s1543_s6 }
  0x82   : > { %p1547_p5 = pneg %p1546_p3  ;;  %p1553_p13 = por %p1552_p7, %p1551_p1 }
  0x84   : > { %p1554_p9 = pnand %p1553_p13, %p1547_p5 }
  0x86   : > { %1557 = shalt.err (!%p1554_p9)
}
  0x87   : > { %p2141_p12 = scmp.ne.s32.totalorder %s2133_s9, 0  ;;  %p2142_p6 = scmp.ne.s32.totalorder %s2138_s26, 0 }
  0x88   : > { %s1924_s23 = sand.u32 (!%p2142_p6), 1, %s1656_s19   ;;  %p2143_p13 = scmp.ne.s32.totalorder (!%p2142_p6), %s2130_s28, 0 }
  0x89   : > { %1374 = dma.hbm_to_vmem [thread:$0]  (!%p2141_p12), %s1901_s13, 128, %s280_s8, %s269_s20  }
  0x8a   : > { %288 = sbr.rel (%p2142_p6) target bundleno = 921 (0x399), region = 36  ;;  %s1927_s1 = sshll.u32 (!%p2142_p6), %s1924_s23, 5 }
  0x8b   : > { %s291_s25 = scalar_lea.sflag (!%p2142_p6), [#allocation3], %s1924_s23  ;;  %s1931_s7 = scalar_lea.vmem (!%p2142_p6), [#allocation2], %s1927_s1 }
  0x91   : > { %1631 = dma.done.wait (%p2143_p13), %s291_s25, 512  }
  0x92   : > { %1633 = vsyncadd (%p2143_p13), %s291_s25, 4294966784  ;;  %s299_s9 = sand.u32 1, %s1729_s22   ;;  %s303_s13 = scalar_lea.vmem [#allocation5], %s1927_s1 }
  0x93   : > { %s300_s26 = scalar_lea.sflag [#allocation6], %s299_s9 }
  0x94   : > { %1635 = dma.done.wait (%p2143_p13), %s300_s26, 1024  }
  0x95   : > { %1637 = vsyncadd (%p2143_p13), %s300_s26, 4294966272  ;;  %s1266_s8 = sshll.u32 %s1924_s23, 3  ;;  %s1945_s20 = scalar_lea.vmem [#allocation7], %s1927_s1 }
  0x96   : > { %s318_s15 = scalar_lea.sflag [#allocation9], %s1924_s23  ;;  %s1948_s16 = scalar_lea.vmem [#allocation8], %s1266_s8 }
  0x97   : > { %1639 = dma.done.wait (%p2143_p13), %s318_s15, 128  }
  0x98   : > { %1641 = vsyncadd (%p2143_p13), %s318_s15, 4294967168  ;;  %v1672_v0 = vmov 0.0   ;;  %vm1673_vm0 = vmmov 0   ;;  %vm381_vm1 = vcmask 64512   ;;  %v372_v1 = vld [vmem:[%s303_s13] sm:$0xff]  ;;  %v373_v2 = vld [vmem:[%s303_s13 + $0x8] sm:$0xff] }
  0x99   : > { %1310 = vmatprep.subr.mxu0 %v1672_v0  ;;  %1312 = vmatprep.mubr.msk.f32.mxu0 %vm1673_vm0, %v1672_v0  ;;  %v368_v3 = vld [vmem:[%s1931_s7] sm:$0xff]  ;;  %v369_v4 = vld [vmem:[%s1931_s7 + $0x8] sm:$0xff]  ;;  %v374_v5 = vld [vmem:[%s303_s13 + $0x10] sm:$0xff]  ;;  %s367_s28 = scalar_lea.vmem [#allocation11], %s1927_s1  ;;  %s1292_s17 = sshll.u32 %s1729_s22, 9 }
  0x9a   : > { %1315 = vmatprep.subr.mxu1 %v1672_v0  ;;  %1317 = vmatprep.mubr.msk.f32.mxu1 %vm1673_vm0, %v1672_v0  ;;  %v375_v6 = vld [vmem:[%s303_s13 + $0x18] sm:$0xff]  ;;  %v370_v7 = vld [vmem:[%s1931_s7 + $0x10] sm:$0xff]  ;;  %v380_v9 = vld [vmem:[%s1948_s16] sm:$0xff]  ;;  %s2022_s27 = scalar_lea.hbm %s2117_s5, %s1292_s17  ;;  %s1077_s6 = sshll.u32 %s367_s28, 4  ;;  %s2024_s6 = int_to_ptr.vmem [resolvable:$true] %s1077_s6 }
  0x9b   : > { %1311 = vmatpush3.xpose.msk.msra.mxu0 %vm381_vm1, %v372_v1  ;;  %1316 = vmatpush3.xpose.msk.msra.mxu1 %vm381_vm1, %v373_v2  ;;  %v371_v8 = vld [vmem:[%s1931_s7 + $0x18] sm:$0xff]  ;;  %vm691_vm2 = vcmp.eq.f32.partialorder %v380_v9, 0.0  ;;  %v376_v50 = vld [vmem:[%s1945_s20] sm:$0xff]  ;;  %v377_v51 = vld [vmem:[%s1945_s20 + $0x8] sm:$0xff]  ;;  %s1048_s14 = scalar_lea.sflag [#allocation12], %s1924_s23  ;;  %s1558_s0 = scalar_lea.vmem %s2024_s6, 512 }
  0x9c   : > { %1320 = vmatprep.subr.mxu0 %v1672_v0  ;;  %1325 = vmatprep.subr.mxu1 %v1672_v0  ;;  %v378_v58 = vld [vmem:[%s1945_s20 + $0x10] sm:$0xff]  ;;  %v379_v62 = vld [vmem:[%s1945_s20 + $0x18] sm:$0xff]  ;;  %p1559_p2 = scmp.ne.s32.totalorder %s2024_s6, %s1558_s0  ;;  %p2144_p0 = scmp.ne.s32.totalorder %s2131_s29, 0 }
  0x9d   : > { %s1674_s10 = smov [#allocation11]  }
  0x9e   : > { %1313 = vmatmul.mubr.msk.f32.vlgmr.msra.gmra.mrb[0].mxu0 %vm381_vm1, %v368_v3  ;;  %1318 = vmatmul.mubr.msk.f32.vlgmr.msra.gmra.mrb[0].mxu1 %vm381_vm1, %v369_v4  ;;  %p1560_p8 = pnand %p1559_p2, %p2144_p0  ;;  %s1562_s25 = sshll.u32 %s1674_s10, 4  ;;  %s1563_s25 = int_to_ptr.vmem [resolvable:$false] %s1562_s25 }
  0x9f   : > { %1321 = vmatpush3.xpose.msk.msra.mxu0 %vm381_vm1, %v374_v5  ;;  %1322 = vmatprep.mubr.msk.f32.mxu0 %vm1673_vm0, %v1672_v0  ;;  %s1564_s7 = scalar_lea.vmem %s1563_s25, 1024  ;;  %p1565_p11 = scmp.lt.s32.totalorder %s2024_s6, %s1563_s25 }
  0xa0   : > { %1326 = vmatpush3.xpose.msk.msra.mxu1 %vm381_vm1, %v375_v6  ;;  %1327 = vmatprep.mubr.msk.f32.mxu1 %vm1673_vm0, %v1672_v0  ;;  %p1561_p10 = pneg %p1560_p8  ;;  %p1566_p4 = scmp.lt.s32.totalorder %s1564_s7, %s1558_s0 }
  0xa1   : > { %1330 = vmatprep.subr.mxu0 %v1672_v0  ;;  %1335 = vmatprep.subr.mxu1 %v1672_v0 }
  0xa2   : > { %1323 = vmatmul.mubr.msk.f32.vlgmr.msra.gmra.mrb[2].mxu0 %vm381_vm1, %v370_v7  ;;  %p1567_p3 = por %p1566_p4, %p1565_p11 }
  0xa3   : > { %1328 = vmatmul.mubr.msk.f32.vlgmr.msra.gmra.mrb[2].mxu1 %vm381_vm1, %v371_v8  ;;  %1332 = vmatprep.mubr.msk.f32.mxu0 %vm1673_vm0, %v1672_v0 }
  0xa4   : > { %1337 = vmatprep.mubr.msk.f32.mxu1 %vm1673_vm0, %v1672_v0  ;;  %1331 = vmatpush3.msra.mxu0 %v376_v50  ;;  %p1568_p5 = pnand %p1567_p3, %p1561_p10 }
  0xa5   : > { %1340 = vmatprep.subr.mxu0 %v1672_v0  ;;  %1336 = vmatpush3.msra.mxu1 %v377_v51 }
  0xa6   : > { %1345 = vmatprep.subr.mxu1 %v1672_v0 }
 0x171   : > { %v454_v10 = vpop.f32.mrb[0].mxu0  ;;  %v530_v11 = vpop.f32.mrb[0].mxu1 }
 0x172   : > { %v687_v12 = vmul.f32 0.125, %v454_v10  ;;  %v1314_v13 = vpop.f32.mrb[1].mxu0  ;;  %v688_v14 = vmul.f32 0.125, %v530_v11  ;;  %v1319_v15 = vpop.f32.mrb[1].mxu1 }
 0x174   : > { %v694_v16 = vsel %vm691_vm2, -1e+09, %v687_v12  ;;  %v695_v17 = vsel %vm691_vm2, -1e+09, %v688_v14 }
 0x175   : > { %v606_v18 = vpop.f32.mrb[2].mxu0  ;;  %v698_v19 = vsel %vm381_vm1, %v694_v16, -inf  ;;  %v701_v25 = vsel %vm381_vm1, %v695_v17, -inf }
 0x176   : > { %v689_v20 = vmul.f32 0.125, %v606_v18  ;;  %699 = vmax.xlane.f32.xlu0 %v698_v19  ;;  %v1324_v21 = vpop.f32.mrb[3].mxu0  ;;  %v682_v22 = vpop.f32.mrb[2].mxu1 }
 0x177   : > { %v690_v23 = vmul.f32 0.125, %v682_v22  ;;  %v1329_v24 = vpop.f32.mrb[3].mxu1 }
 0x178   : > { %v696_v26 = vsel %vm691_vm2, -1e+09, %v689_v20 }
 0x179   : > { %v704_v27 = vsel %vm381_vm1, %v696_v26, -inf  ;;  %v697_v28 = vsel %vm691_vm2, -1e+09, %v690_v23 }
 0x17a   : > { %702 = vmax.xlane.f32.xlu0 %v701_v25  ;;  %705 = vmax.xlane.f32.xlu1 %v704_v27  ;;  %v707_v29 = vsel %vm381_vm1, %v697_v28, -inf }
 0x17e   : > { %708 = vmax.xlane.f32.xlu1 %v707_v29 }
 0x203   : > { %v700_v30 = vpop.xlane.xlu0 %699 }
 0x204   : > { %v710_v31 = vsub.f32 %v694_v16, %v700_v30 }
 0x206   : > { %v714_v32 = vmul.f32 1.442695, %v710_v31 }
 0x207   : > { %v703_v33 = vpop.xlane.xlu0 %702  ;;  %v706_v34 = vpop.xlane.xlu1 %705 }
 0x208   : > { %1422 = vpow2.f32 %v714_v32  ;;  %v711_v35 = vsub.f32 %v695_v17, %v703_v33  ;;  %v712_v36 = vsub.f32 %v696_v26, %v706_v34 }
 0x20a   : > { %v716_v37 = vmul.f32 1.442695, %v711_v35  ;;  %v718_v38 = vmul.f32 1.442695, %v712_v36 }
 0x20b   : > { %v709_v39 = vpop.xlane.xlu1 %708 }
 0x20c   : > { %1424 = vpow2.f32 %v716_v37  ;;  %v713_v40 = vsub.f32 %v697_v28, %v709_v39 }
 0x20d   : > { %1426 = vpow2.f32 %v718_v38 }
 0x20e   : > { %v720_v41 = vmul.f32 1.442695, %v713_v40 }
 0x210   : > { %1428 = vpow2.f32 %v720_v41 }
 0x212   : > { %v1423_v42 = vpop.eup %1422 }
 0x213   : > { %v722_v43 = vsel %vm381_vm1, %v1423_v42, 0.0 }
 0x214   : > { %723 = vadd.xlane.f32.xlu0 %v722_v43 }
 0x216   : > { %v1425_v44 = vpop.eup %1424 }
 0x217   : > { %v1427_v45 = vpop.eup %1426  ;;  %v725_v46 = vsel %vm381_vm1, %v1425_v44, 0.0 }
 0x218   : > { %726 = vadd.xlane.f32.xlu1 %v725_v46  ;;  %v728_v47 = vsel %vm381_vm1, %v1427_v45, 0.0 }
 0x219   : > { %729 = vadd.xlane.f32.xlu0 %v728_v47 }
 0x21a   : > { %v1429_v48 = vpop.eup %1428 }
 0x21b   : > { %v731_v49 = vsel %vm381_vm1, %v1429_v48, 0.0 }
 0x21c   : > { %732 = vadd.xlane.f32.xlu1 %v731_v49 }
 0x2a1   : > { %v724_v52 = vpop.xlane.xlu0 %723 }
 0x2a2   : > { %1430 = vrcp.f32 %v724_v52 }
 0x2a5   : > { %v727_v53 = vpop.xlane.xlu1 %726 }
 0x2a6   : > { %v730_v54 = vpop.xlane.xlu0 %729  ;;  %1432 = vrcp.f32 %v727_v53 }
 0x2a7   : > { %1434 = vrcp.f32 %v730_v54 }
 0x2a9   : > { %v733_v55 = vpop.xlane.xlu1 %732 }
 0x2aa   : > { %1436 = vrcp.f32 %v733_v55 }
 0x2ac   : > { %v1431_v56 = vpop.eup %1430 }
 0x2ad   : > { %v738_v57 = vmul.f32 %v1431_v56, %v1423_v42 }
 0x2af   : > { %742 = vst.msk [vmem:[%s367_s28] sm:$0xff] %vm381_vm1, %v738_v57  ;;  %1333 = vmatmul.mubr.msk.f32.vlgmr.msra.gmra.mrb[4].mxu0 %vm381_vm1, %v738_v57 }
 0x2b0   : > { %v1433_v59 = vpop.eup %1432  ;;  %1341 = vmatpush3.msra.mxu0 %v378_v58  ;;  %1342 = vmatprep.mubr.msk.f32.mxu0 %vm1673_vm0, %v1672_v0 }
 0x2b1   : > { %v1435_v60 = vpop.eup %1434  ;;  %v739_v61 = vmul.f32 %v1433_v59, %v1425_v44 }
 0x2b2   : > { %v740_v63 = vmul.f32 %v1435_v60, %v1427_v45 }
 0x2b3   : > { %743 = vst.msk [vmem:[%s367_s28 + $0x8] sm:$0xff] %vm381_vm1, %v739_v61  ;;  %1338 = vmatmul.mubr.msk.f32.vlgmr.msra.gmra.mrb[4].mxu1 %vm381_vm1, %v739_v61 }
 0x2b4   : > { %v1437_v1 = vpop.eup %1436  ;;  %744 = vst.msk [vmem:[%s367_s28 + $0x10] sm:$0xff] %vm381_vm1, %v740_v63  ;;  %1343 = vmatmul.mubr.msk.f32.vlgmr.msra.gmra.mrb[6].mxu0 %vm381_vm1, %v740_v63  ;;  %1346 = vmatpush3.msra.mxu1 %v379_v62 }
 0x2b5   : > { %v741_v2 = vmul.f32 %v1437_v1, %v1429_v48  ;;  %1347 = vmatprep.mubr.msk.f32.mxu1 %vm1673_vm0, %v1672_v0 }
 0x2b7   : > { %745 = vst.msk [vmem:[%s367_s28 + $0x18] sm:$0xff] %vm381_vm1, %v741_v2  ;;  %1348 = vmatmul.mubr.msk.f32.vlgmr.msra.gmra.mrb[6].mxu1 %vm381_vm1, %v741_v2 }
 0x2b8   : > { %1571 = shalt.err (!%p1568_p5)
}
 0x2b9   : > { %s1572_s9 = scalar_lea.hbm %s2022_s27, 512  ;;  %s1576_s8 = scalar_lea.hbm %s2117_s5, 1024 }
 0x2ba   : > { %p1573_p1 = scmp.ne.s32.totalorder %s2022_s27, %s1572_s9  ;;  %p1577_p12 = scmp.lt.u32.totalorder %s2022_s27, %s2117_s5 }
 0x2bb   : > { %p1578_p6 = scmp.lt.u32.totalorder %s1576_s8, %s1572_s9  ;;  %p1580_p2 = scmp.lt.u32.totalorder %s1572_s9, %s2022_s27 }
 0x2bc   : > { %p1574_p7 = pnand %p1573_p1, %p2144_p0 }
 0x2bd   : > { %p1579_p13 = por %p1578_p6, %p1577_p12 }
 0x2be   : > { %p1575_p9 = pneg %p1574_p7 }
 0x2bf   : > { %p1581_p8 = por %p1580_p2, %p1579_p13 }
 0x2c1   : > { %p1582_p10 = pnand %p1581_p8, %p1575_p9 }
 0x2c3   : > { %1585 = shalt.err (!%p1582_p10)
}
 0x2c4   : > { %s1675_s16 = smov 128   ;;  %s1676_s28 = smov 8  }
 0x2c5   : > { %1359 = dma.vmem_to_hbm [thread:$0]  (%p2144_p0), %s2024_s6, 512, %s2022_s27, %s1048_s14, %s1675_s16, %s1675_s16, %s1676_s28  }
 0x2c6   : > { %s360_s11 = scalar_lea.vmem [#allocation10], %s1927_s1  ;;  %s2064_s6 = scalar_lea.hbm %s2116_s4, %s1292_s17 }
 0x2c7   : > { %s1061_s12 = sshll.u32 %s360_s11, 4  ;;  %s1043_s14 = scalar_lea.sflag [#allocation4], %s1924_s23  ;;  %s2056_s12 = int_to_ptr.vmem [resolvable:$true] %s1061_s12 }
 0x2c8   : > { %s1586_s0 = scalar_lea.vmem %s2056_s12, 512  ;;  %s1677_s10 = smov [#allocation10]  }
 0x2c9   : > { %p1587_p11 = scmp.ne.s32.totalorder %s2056_s12, %s1586_s0  ;;  %s1590_s25 = sshll.u32 %s1677_s10, 4  ;;  %s1591_s25 = int_to_ptr.vmem [resolvable:$false] %s1590_s25 }
 0x2ca   : > { %s1592_s7 = scalar_lea.vmem %s1591_s25, 1024  ;;  %p1593_p5 = scmp.lt.s32.totalorder %s2056_s12, %s1591_s25 }
 0x2cb   : > { %p1588_p4 = pnand %p1587_p11, %p2144_p0  ;;  %p1594_p1 = scmp.lt.s32.totalorder %s1592_s7, %s1586_s0 }
 0x2cd   : > { %p1589_p3 = pneg %p1588_p4  ;;  %p1595_p7 = por %p1594_p1, %p1593_p5 }
 0x2cf   : > { %p1596_p9 = pnand %p1595_p7, %p1589_p3 }
 0x382   : > { %v815_v0 = vpop.f32.mrb[4].mxu0 }
 0x383   : > { %1038 = vst.msk [vmem:[%s360_s11] sm:$0xff] %vm381_vm1, %v815_v0  ;;  %v1334_v3 = vpop.f32.mrb[5].mxu0 }
 0x386   : > { %v888_v4 = vpop.f32.mrb[4].mxu1 }
 0x387   : > { %1039 = vst.msk [vmem:[%s360_s11 + $0x8] sm:$0xff] %vm381_vm1, %v888_v4  ;;  %v961_v5 = vpop.f32.mrb[6].mxu0  ;;  %v1339_v6 = vpop.f32.mrb[5].mxu1 }
 0x388   : > { %1040 = vst.msk [vmem:[%s360_s11 + $0x10] sm:$0xff] %vm381_vm1, %v961_v5  ;;  %v1344_v7 = vpop.f32.mrb[7].mxu0 }
 0x38a   : > { %v1034_v8 = vpop.f32.mrb[6].mxu1 }
 0x38b   : > { %1041 = vst.msk [vmem:[%s360_s11 + $0x18] sm:$0xff] %vm381_vm1, %v1034_v8  ;;  %v1349_v9 = vpop.f32.mrb[7].mxu1 }
 0x38c   : > { %1599 = shalt.err (!%p1596_p9)
}
 0x38d   : > { %s1600_s22 = scalar_lea.hbm %s2064_s6, 512  ;;  %s1604_s26 = scalar_lea.hbm %s2116_s4, 1024 }
 0x38e   : > { %p1601_p12 = scmp.ne.s32.totalorder %s2064_s6, %s1600_s22  ;;  %p1605_p2 = scmp.lt.u32.totalorder %s2064_s6, %s2116_s4 }
 0x38f   : > { %p1606_p8 = scmp.lt.u32.totalorder %s1604_s26, %s1600_s22  ;;  %p1608_p11 = scmp.lt.u32.totalorder %s1600_s22, %s2064_s6 }
 0x390   : > { %p1602_p6 = pnand %p1601_p12, %p2144_p0 }
 0x391   : > { %p1607_p10 = por %p1606_p8, %p1605_p2 }
 0x392   : > { %p1603_p13 = pneg %p1602_p6 }
 0x393   : > { %p1609_p4 = por %p1608_p11, %p1607_p10 }
 0x395   : > { %p1610_p3 = pnand %p1609_p4, %p1603_p13 }
 0x397   : > { %1613 = shalt.err (!%p1610_p3)
}
 0x398   : > { %1358 = dma.vmem_to_hbm [thread:$0]  (%p2144_p0), %s2056_s12, 512, %s2064_s6, %s1043_s14, %s1675_s16, %s1675_s16, %s1676_s28  }
 0x399 PF: > { %s1092_s20 = sand.u32 1, %s1652_s18   ;;  %p2145_p5 = scmp.ne.s32.totalorder %s2132_s30, 0 }
 0x39a   : > { %p2146_p1 = scmp.ge.s32.totalorder %s1664_s21, 2  ;;  %s1093_s15 = scalar_lea.sflag [#allocation4], %s1092_s20 }
 0x39c   : > { %p1376_p7 = pnand %p2146_p1, %p2145_p5 }
 0x39e   : > { %1643 = dma.done.wait (!%p1376_p7), %s1093_s15, 512  }
 0x39f   : > { %1645 = vsyncadd (!%p1376_p7), %s1093_s15, 4294966784  ;;  %s1102_s29 = scalar_lea.sflag [#allocation12], %s1092_s20 }
 0x3a0   : > { %1647 = dma.done.wait (!%p1376_p7), %s1102_s29, 512  }
 0x3a1   : > { %1649 = vsyncadd (!%p1376_p7), %s1102_s29, 4294966784  ;;  %s2147_s23 = sld [smem:[#allocation18_spill]]  ;;  %s2148_s20 = sld [smem:[#allocation19_spill]] }
 0x3a2   : > { %p28_p0 = scmp.ge.s32.totalorder %s1733_s24, 4   ;;  %s2149_s18 = smov %s1656_s19 }
 0x3a3   : > { %s2151_s21 = smov %s1733_s24 }
 0x3a4   :  { %30 = sbr.rel (!%p28_p0) target bundleno = 14 (0xe), region = 135 }
 0x3a7   : > { %s2150_s19 = smov %s2147_s23 }
 0x3ab   :  { %1107 = vsyncpa [#allocation3], 1 }
 0x3ac   :  { %1109 = vsyncpa [#allocation3 + $0x1], 1 }
 0x3ad   :  { %1110 = vsyncpa [#allocation6], 1 }
 0x3ae   :  { %1112 = vsyncpa [#allocation6 + $0x1], 1 }
 0x3af   :  { %1113 = vsyncpa [#allocation9], 1 }
 0x3b0   :  { %1115 = vsyncpa [#allocation9 + $0x1], 1 }
 0x3b1   :  { %1116 = vsyncpa [#allocation4], 1 }
 0x3b2   :  { %1118 = vsyncpa [#allocation4 + $0x1], 1 }
 0x3b3   :  { %1119 = vsyncpa [#allocation12], 1 }
 0x3b4   :  { %1121 = vsyncpa [#allocation12 + $0x1], 1 }

</bundles_post_ra>
